<compile_context>
chip_gen: v6e
topology: v6e:2x2x1
jax: 0.10.0
libtpu: 0.0.40
codegen_flags: <defaults>
</compile_context>

<pallas_src>
import functools

import jax
import jax.numpy as jnp
from jax.experimental import pallas as pl
from jax.experimental.pallas import tpu as pltpu


def _round_up(x: int, m: int) -> int:
    return ((x + m - 1) // m) * m


def _largest_tile(n: int, limit: int, step: int) -> int:
    """Largest multiple of `step` that divides `n` and is <= `limit`.

    `n` must already be a multiple of `step`, so `step` itself always works.
    """
    cand = (min(limit, n) // step) * step
    while cand > step:
        if n % cand == 0:
            return cand
        cand -= step
    return step


def _pick_tiles(r_pad: int, t_pad: int) -> tuple[int, int]:
    """Pick (bm, tn) maximizing block size under a VMEM budget.

    Budget: 2 inputs x 2 pipeline buffers x (bm*tn*4B) <= ~16 MiB, i.e.
    bm*tn <= 2**20 elements, leaving ample headroom under the 32 MiB scoped
    VMEM limit for the scratch accumulator and the tiny output.
    """
    elem_budget = 1 << 20
    tn = _largest_tile(t_pad, limit=4096, step=128)
    row_cap = max(8, ((elem_budget // tn) // 8) * 8)
    bm = _largest_tile(r_pad, limit=min(512, row_cap), step=8)
    return bm, tn


def _nse_loss_kernel(y_pred_ref, y_true_ref, q_stds_ref, out_ref, acc_ref,
                     *, eps: float, lane_groups: int):
    c = pl.program_id(1)  # position along the T (reduction) axis

    @pl.when(c == 0)
    def _():
        acc_ref[...] = jnp.zeros_like(acc_ref)

    # Fold this block's squared errors lane-group-wise into the (bm, 128)
    # accumulator.  All adds are lane-aligned vreg adds (VPU); cross-lane /
    # cross-sublane reduction is deferred to the final step.
    def sq_group(j):
        sl = slice(j * 128, (j + 1) * 128)
        d = (y_pred_ref[:, sl].astype(jnp.float32)
             - y_true_ref[:, sl].astype(jnp.float32))
        return d * d

    partial = sq_group(0)
    for j in range(1, lane_groups):  # static, unrolled
        partial = partial + sq_group(j)
    acc_ref[...] += partial

    # Last step along the reduction axis: apply per-row weights, collapse rows
    # and emit a dense 128-lane partial sum for this row block.
    @pl.when(c == pl.num_programs(1) - 1)
    def _():
        q = q_stds_ref[...].astype(jnp.float32)            # (bm, 1)
        w = 1.0 / ((q + eps) * (q + eps))                  # 1/(std+eps)^2
        out_ref[...] = jnp.sum(w * acc_ref[...], axis=0,
                               keepdims=True).reshape(out_ref.shape)


def nse_loss(y_pred: jax.Array, y_true: jax.Array, q_stds: jax.Array,
             eps: float = 0.1) -> jax.Array:
    """Pallas TPU implementation of NSELoss.forward.  Returns a scalar f32."""
    B, T, K = y_pred.shape
    assert y_true.shape == (B, T, K)
    assert q_stds.shape == (B, K)
    total = B * T * K

    # Lane-dense layout: rows = (batch, target), lanes = time.
    if K == 1:
        yp = y_pred.reshape(B, T)
        yt = y_true.reshape(B, T)
    else:
        yp = jnp.transpose(y_pred, (0, 2, 1)).reshape(B * K, T)
        yt = jnp.transpose(y_true, (0, 2, 1)).reshape(B * K, T)
    qs = q_stds.reshape(B * K, 1)

    R = B * K
    r_pad = _round_up(R, 8)
    t_pad = _round_up(T, 128)
    bm, tn = _pick_tiles(r_pad, t_pad)

    # Zero padding is exact: padded (pred - true) is 0, so it adds nothing.
    if (r_pad, t_pad) != (R, T):
        yp = jnp.pad(yp, ((0, r_pad - R), (0, t_pad - T)))
        yt = jnp.pad(yt, ((0, r_pad - R), (0, t_pad - T)))
    if r_pad != R:
        qs = jnp.pad(qs, ((0, r_pad - R), (0, 0)))

    gr = r_pad // bm
    gc = t_pad // tn

    kernel = functools.partial(_nse_loss_kernel, eps=float(eps),
                               lane_groups=tn // 128)

    partials = pl.pallas_call(
        kernel,
        out_shape=jax.ShapeDtypeStruct((gr, 1, 128), jnp.float32),
        grid_spec=pltpu.PrefetchScalarGridSpec(
            num_scalar_prefetch=0,
            grid=(gr, gc),
            in_specs=[
                pl.BlockSpec((bm, tn), lambda r, c: (r, c)),
                pl.BlockSpec((bm, tn), lambda r, c: (r, c)),
                pl.BlockSpec((bm, 1), lambda r, c: (r, 0)),
            ],
            out_specs=pl.BlockSpec((1, 1, 128), lambda r, c: (r, 0, 0)),
            scratch_shapes=[pltpu.VMEM((bm, 128), jnp.float32)],
        ),
        compiler_params=pltpu.CompilerParams(
            # Row blocks are independent (megacore-shardable); the T axis is
            # the sequential reduction and must be innermost.
            dimension_semantics=("parallel", "arbitrary"),
            # <=16 MiB of double-buffered inputs + small scratch/output;
            # explicit cap keeps us safely within every generation's VMEM.
            vmem_limit_bytes=32 * 1024 * 1024,
        ),
    )(yp, yt, qs)

    # Tiny (gr, 1, 128) partial-sum array: finish the reduction in XLA.
    return jnp.sum(partials) / float(total)


def _nse_loss_ref(y_pred, y_true, q_stds, eps=0.1):
    squared_error = (y_pred - y_true) ** 2
    weights = 1.0 / (q_stds + eps) ** 2                # (B, K)
    weights = jnp.broadcast_to(weights[:, None, :], y_pred.shape)
    return jnp.mean(weights * squared_error)


if __name__ == "__main__":
    key = jax.random.PRNGKey(0)
    k1, k2, k3, k4, k5, k6 = jax.random.split(key, 6)

    # Case 1: common hydrology layout (single target).
    B, T, K = 4, 16, 1
    y_pred = jax.random.normal(k1, (B, T, K), dtype=jnp.float32)
    y_true = jax.random.normal(k2, (B, T, K), dtype=jnp.float32)
    q_stds = jax.random.uniform(k3, (B, K), dtype=jnp.float32,
                                minval=0.1, maxval=2.0)
    loss = nse_loss(y_pred, y_true, q_stds, eps=0.1)
    jax.block_until_ready(loss)
    ref = _nse_loss_ref(y_pred, y_true, q_stds, eps=0.1)
    assert jnp.allclose(loss, ref, rtol=1e-5, atol=1e-6), (loss, ref)

    # Case 2: non-aligned shapes + multiple targets (exercises padding path).
    B2, T2, K2 = 3, 200, 2
    y_pred2 = jax.random.normal(k4, (B2, T2, K2), dtype=jnp.float32)
    y_true2 = jax.random.normal(k5, (B2, T2, K2), dtype=jnp.float32)
    q_stds2 = jax.random.uniform(k6, (B2, K2), dtype=jnp.float32,
                                 minval=0.1, maxval=2.0)
    loss2 = nse_loss(y_pred2, y_true2, q_stds2, eps=0.1)
    jax.block_until_ready(loss2)
    ref2 = _nse_loss_ref(y_pred2, y_true2, q_stds2, eps=0.1)
    assert jnp.allclose(loss2, ref2, rtol=1e-5, atol=1e-6), (loss2, ref2)

    print("KERNEL_OK")
</pallas_src>

<mosaic_0001>
module attributes {stable_mosaic.version = 11 : i64} {
  func.func @_nse_loss_kernel(%arg0: i32, %arg1: i32, %arg2: memref<8x128xf32, #tpu.memory_space<vmem>>, %arg3: memref<8x128xf32, #tpu.memory_space<vmem>>, %arg4: memref<8x1xf32, #tpu.memory_space<vmem>>, %arg5: memref<1x1x128xf32, #tpu.memory_space<vmem>>, %arg6: memref<8x128xf32, #tpu.memory_space<vmem>>) attributes {dimension_semantics = [#tpu.dimension_semantics<parallel>, #tpu.dimension_semantics<arbitrary>], iteration_bounds = array<i64: 1, 1>, scalar_prefetch = 0 : i64, scratch_operands = 1 : i64, tpu.core_type = #tpu.core_type<tc>, window_params = [{transform_indices = @transform_0, window_bounds = array<i64: 8, 128>}, {transform_indices = @transform_1, window_bounds = array<i64: 8, 128>}, {transform_indices = @transform_2, window_bounds = array<i64: 8, 1>}, {transform_indices = @transform_3, window_bounds = array<i64: 1, 1, 128>}]} {
    %c0_i32 = arith.constant 0 : i32
    %0 = arith.cmpi eq, %arg1, %c0_i32 : i32
    %1 = arith.extui %0 : i1 to i32
    %c0_i32_0 = arith.constant 0 : i32
    %2 = arith.cmpi ne, %1, %c0_i32_0 : i32
    scf.if %2 {
      %cst = arith.constant 0.000000e+00 : f32
      %13 = vector.broadcast %cst : f32 to vector<8x128xf32>
      %c0_10 = arith.constant 0 : index
      %c0_11 = arith.constant 0 : index
      %14 = vector.load %arg6[%c0_10, %c0_11] : memref<8x128xf32, #tpu.memory_space<vmem>>, vector<8x128xf32>
      tpu.vector_store %arg6[%c0_10, %c0_11], %13 {strides = array<i32>} : memref<8x128xf32, #tpu.memory_space<vmem>>, vector<8x128xf32>,
    } else {
    }
    %c0 = arith.constant 0 : index
    %c0_1 = arith.constant 0 : index
    %3 = vector.load %arg2[%c0, %c0_1] : memref<8x128xf32, #tpu.memory_space<vmem>>, vector<8x128xf32>
    %c0_2 = arith.constant 0 : index
    %c0_3 = arith.constant 0 : index
    %4 = vector.load %arg3[%c0_2, %c0_3] : memref<8x128xf32, #tpu.memory_space<vmem>>, vector<8x128xf32>
    %5 = arith.subf %3, %4 : vector<8x128xf32>
    %6 = arith.mulf %5, %5 : vector<8x128xf32>
    %c0_4 = arith.constant 0 : index
    %c0_5 = arith.constant 0 : index
    %7 = vector.load %arg6[%c0_4, %c0_5] : memref<8x128xf32, #tpu.memory_space<vmem>>, vector<8x128xf32>
    %8 = arith.addf %7, %6 : vector<8x128xf32>
    %c0_6 = arith.constant 0 : index
    %c0_7 = arith.constant 0 : index
    %9 = vector.load %arg6[%c0_6, %c0_7] : memref<8x128xf32, #tpu.memory_space<vmem>>, vector<8x128xf32>
    tpu.vector_store %arg6[%c0_6, %c0_7], %8 {strides = array<i32>} : memref<8x128xf32, #tpu.memory_space<vmem>>, vector<8x128xf32>,
    %c0_i32_8 = arith.constant 0 : i32
    %10 = arith.cmpi eq, %arg1, %c0_i32_8 : i32
    %11 = arith.extui %10 : i1 to i32
    %c0_i32_9 = arith.constant 0 : i32
    %12 = arith.cmpi ne, %11, %c0_i32_9 : i32
    scf.if %12 {
      %c0_10 = arith.constant 0 : index
      %c0_11 = arith.constant 0 : index
      %13 = vector.load %arg4[%c0_10, %c0_11] : memref<8x1xf32, #tpu.memory_space<vmem>>, vector<8x1xf32>
      %cst = arith.constant 1.000000e-01 : f32
      %14 = vector.broadcast %cst : f32 to vector<8x1xf32>
      %15 = arith.addf %13, %14 : vector<8x1xf32>
      %cst_12 = arith.constant 1.000000e-01 : f32
      %16 = vector.broadcast %cst_12 : f32 to vector<8x1xf32>
      %17 = arith.addf %13, %16 : vector<8x1xf32>
      %18 = arith.mulf %15, %17 : vector<8x1xf32>
      %cst_13 = arith.constant 1.000000e+00 : f32
      %19 = vector.broadcast %cst_13 : f32 to vector<8x1xf32>
      %20 = arith.divf %19, %18 : vector<8x1xf32>
      %c0_14 = arith.constant 0 : index
      %c0_15 = arith.constant 0 : index
      %21 = vector.load %arg6[%c0_14, %c0_15] : memref<8x128xf32, #tpu.memory_space<vmem>>, vector<8x128xf32>
      %22 = vector.broadcast %20 : vector<8x1xf32> to vector<8x128xf32>
      %23 = arith.mulf %22, %21 : vector<8x128xf32>
      %cst_16 = arith.constant dense<0.000000e+00> : vector<128xf32>
      %24 = vector.multi_reduction <add>, %23, %cst_16 [0] : vector<8x128xf32> to vector<128xf32>
      %25 = vector.shape_cast %24 : vector<128xf32> to vector<1x128xf32>
      %26 = vector.shape_cast %25 : vector<1x128xf32> to vector<1x1x128xf32>
      %c0_17 = arith.constant 0 : index
      %c0_18 = arith.constant 0 : index
      %c0_19 = arith.constant 0 : index
      %27 = vector.load %arg5[%c0_17, %c0_18, %c0_19] : memref<1x1x128xf32, #tpu.memory_space<vmem>>, vector<1x1x128xf32>
      tpu.vector_store %arg5[%c0_17, %c0_18, %c0_19], %26 {strides = array<i32>} : memref<1x1x128xf32, #tpu.memory_space<vmem>>, vector<1x1x128xf32>,
    } else {
    }
    return
  }
  func.func @transform_0(%arg0: i32, %arg1: i32) -> (i32, i32) {
    %c0_i32 = arith.constant 0 : i32
    return %arg0, %arg1 : i32, i32
  }
  func.func @transform_1(%arg0: i32, %arg1: i32) -> (i32, i32) {
    %c0_i32 = arith.constant 0 : i32
    return %arg0, %arg1 : i32, i32
  }
  func.func @transform_2(%arg0: i32, %arg1: i32) -> (i32, i32) {
    %c0_i32 = arith.constant 0 : i32
    %c0_i32_0 = arith.constant 0 : i32
    return %arg0, %c0_i32 : i32, i32
  }
  func.func @transform_3(%arg0: i32, %arg1: i32) -> (i32, i32, i32) {
    %c0_i32 = arith.constant 0 : i32
    %c0_i32_0 = arith.constant 0 : i32
    %c0_i32_1 = arith.constant 0 : i32
    return %arg0, %c0_i32, %c0_i32_0 : i32, i32, i32
  }
}

</mosaic_0001>

<bundles_post_ra>
// kernel: tpu_custom_call.1
= control target key start
LH: loop header
LB: loop body
LE: loop exit
PB: predicated region body
PF: predicated region fallthrough
CT: control target
= control target key end

     0   :  { %8 = vsyncpa [#allocation4], 0  ;;  %s161_s0 = inlined_call_operand.vmem [shape: f32[8,128], index: 0, kind: input, shape index: {}]   ;;  %s162_s1 = inlined_call_operand.hbm [shape: f32[8,128], index: 1, kind: input, shape index: {}]   ;;  %s163_s2 = inlined_call_operand.vmem [shape: f32[8,1], index: 2, kind: input, shape index: {}]   ;;  %s164_s3 = inlined_call_operand.hbm [shape: f32[1,1,128], index: 3, kind: output, shape index: {}]  }
   0x1   :  { %9 = vsyncpa [#allocation5], 0  ;;  %s126_s12 = smov [#allocation3]  }
   0x2   :  { %s18_s13 = sshll.u32 %s126_s12, 4  ;;  %s19_s13 = int_to_ptr.vmem [resolvable:$true] %s18_s13 }
   0x3   :  { %s90_s14 = scalar_lea.vmem %s19_s13, 128  ;;  %p95_p1 = scmp.lt.s32.totalorder %s19_s13, %s19_s13 }
   0x4   :  { %p91_p0 = scmp.ne.s32.totalorder %s19_s13, %s90_s14  ;;  %p96_p2 = scmp.lt.s32.totalorder %s90_s14, %s90_s14 }
   0x6   :  { %p97_p3 = por %p96_p2, %p95_p1 }
   0x8   :  { %p98_p4 = pnand %p97_p3, %p91_p0 }
   0xa   :  { %101 = shalt.err (!%p98_p4)
}
   0xb   :  { %21 = dma.hbm_to_vmem [thread:$0]  %s162_s1, 128, %s19_s13, [#allocation4]  }
   0xc   :  { %122 = dma.done.wait [#allocation4], 128  }
   0xd   :  { %123 = vsyncadd [#allocation4], 4294967168  ;;  %v127_v0 = vmov 0   ;;  %v42_v1 = vld [vmem:[%s163_s2] sm:$0xff]  ;;  %s128_s1 = smov [#allocation6]  }
   0xe   :  { %79 = vset.pattern.permute.xlu0 %v127_v0  ;;  %v43_v2 = vadd.f32 0.1, %v42_v1  ;;  %v32_v5 = vld [vmem:[%s161_s0] sm:$0xff]  ;;  %s67_s2 = sshll.u32 %s128_s1, 4  ;;  %s68_s2 = int_to_ptr.vmem [resolvable:$true] %s67_s2 }
   0xf   :  { %v33_v6 = vld [vmem:[#allocation3] sm:$0xff]  ;;  %s102_s21 = scalar_lea.vmem %s68_s2, 16  ;;  %s106_s22 = scalar_lea.vmem %s68_s2, 32 }
  0x10   :  { %v44_v3 = vmul.f32 %v43_v2, %v43_v2  ;;  %v34_v7 = vsub.f32 %v32_v5, %v33_v6  ;;  %p103_p5 = scmp.ne.s32.totalorder %s68_s2, %s102_s21  ;;  %p107_p6 = scmp.lt.s32.totalorder %s68_s2, %s68_s2 }
  0x11   :  { %p108_p7 = scmp.lt.s32.totalorder %s106_s22, %s102_s21 }
  0x12   :  { %80 = vrcp.f32 %v44_v3  ;;  %v35_v8 = vmul.f32 %v34_v7, %v34_v7 }
  0x13   :  { %p109_p8 = por %p108_p7, %p107_p6 }
  0x15   :  { %p110_p9 = pnand %p109_p8, %p103_p5 }
  0x1f   :  { %v81_v4 = vpop.eup %80 }
  0x20   :  { %50 = vperm.xlu0 %79, %v81_v4  }
  0x9b   :  { %v51_v9 = vpop.permute.xlu0 %50 }
  0x9c   :  { %v53_v10 = vmul.f32 %v51_v9, %v35_v8 }
  0x9e   :  { %v54_v11 = vrot.slane %v53_v10, 4 }
  0xa0   :  { %v55_v12 = vadd.f32 %v54_v11, %v53_v10 }
  0xa2   :  { %v56_v13 = vrot.slane %v55_v12, 2 }
  0xa4   :  { %v57_v14 = vadd.f32 %v56_v13, %v55_v12 }
  0xa6   :  { %v58_v15 = vrot.slane %v57_v14, 1 }
  0xa8   :  { %v59_v16 = vadd.f32 %v58_v15, %v57_v14 }
  0xaa   :  { %60 = vst [vmem:[#allocation6] sm:$0x1] %v59_v16 }
  0xab   :  { %113 = shalt.err (!%p110_p9)
}
  0xac   :  { %70 = dma.vmem_to_hbm [thread:$0]  %s68_s2, 16, %s164_s3, [#allocation5]  }
  0xad   :  { %124 = dma.done.wait [#allocation5], 16  }
  0xae   :  { %125 = vsyncadd [#allocation5], 4294967280 }
  0xaf   :  { %74 = vsyncpa [#allocation4], 1 }
  0xb0   :  { %75 = vsyncpa [#allocation5], 1 }

</bundles_post_ra>
